<compile_context>
chip_gen: v6e
topology: v6e:2x2x1
jax: 0.10.0
libtpu: 0.0.40
codegen_flags: <defaults>
</compile_context>

<pallas_src>
import functools

import jax
import jax.numpy as jnp
from jax.experimental import pallas as pl
from jax.experimental.pallas import tpu as pltpu

_HEADROOM = 16 << 20


def _clipp_ce_kernel(*refs, col_chunk):
    """refs = (x_0..x_{G-1}, out); x_k: (TM, N) logits tile, out: (G, TM) CE."""
    out_ref = refs[-1]
    in_refs = refs[:-1]
    tm = out_ref.shape[1]
    n_cols = in_refs[0].shape[1]
    num_chunks = n_cols // col_chunk

    i = pl.program_id(0)
    col0 = pl.multiple_of(i * tm, tm)

    # (TM, TM) diagonal mask, built once per tile and reused for all matrices.
    rows = jax.lax.broadcasted_iota(jnp.int32, (tm, tm), 0)
    cols = jax.lax.broadcasted_iota(jnp.int32, (tm, tm), 1)
    diag_mask = rows == cols

    for k, ref in enumerate(in_refs):
        # ---- Row max, computed in the input dtype (no full-width f32 copy).
        if num_chunks == 1:
            m = jnp.max(ref[...], axis=-1).astype(jnp.float32)
        else:
            def max_body(c, m, ref=ref):
                start = pl.multiple_of(c * col_chunk, col_chunk)
                blk = ref[:, pl.ds(start, col_chunk)]
                return jnp.maximum(m, jnp.max(blk, axis=-1).astype(jnp.float32))
            m = jax.lax.fori_loop(0, num_chunks, max_body,
                                  jnp.full((tm,), -jnp.inf, dtype=jnp.float32))
        m_col = m[:, None]

        # ---- sum(exp(x - m)) in f32, one column chunk at a time so only a
        # (TM, col_chunk) f32 temp is ever live.
        # TODO(synk): on v7x with bf16 inputs the single EUP slot may become
        # the limiter; if the bundle shows EUP saturation, do the exp in bf16.
        if num_chunks == 1:
            s = jnp.sum(jnp.exp(ref[...].astype(jnp.float32) - m_col), axis=-1)
        else:
            def sum_body(c, s, ref=ref):
                start = pl.multiple_of(c * col_chunk, col_chunk)
                blk = ref[:, pl.ds(start, col_chunk)].astype(jnp.float32)
                return s + jnp.sum(jnp.exp(blk - m_col), axis=-1)
            s = jax.lax.fori_loop(0, num_chunks, sum_body,
                                  jnp.zeros((tm,), jnp.float32))
        lse = m + jnp.log(s)

        # ---- Diagonal (label = global row index): the (TM, TM) sub-block at
        # column offset i*TM.
        if tm == n_cols:
            blk = ref[...].astype(jnp.float32)
        else:
            blk = ref[:, pl.ds(col0, tm)].astype(jnp.float32)
        diag = jnp.sum(jnp.where(diag_mask, blk, 0.0), axis=-1)

        # Write each CE row directly (no (G, TM) stack / sublane relayout).
        out_ref[k, :] = lse - diag


def _vmem_capacity_bytes():
    try:
        cap = getattr(pltpu.get_tpu_info(), "vmem_capacity_bytes", None)
        if cap:
            return int(cap)
    except Exception:
        pass
    return 64 << 20  # conservative fallback == v7x per-TensorCore VMEM


def _col_chunk_for(n):
    if n % 128 != 0:
        return n
    cc = min(n, 2048)
    while cc > 128 and n % cc != 0:
        cc -= 128
    return cc


def _vmem_need(tm, n, n_mats, itemsize, col_chunk):
    inputs = n_mats * 2 * tm * n * itemsize               # double-buffered blocks
    temps = 2 * tm * col_chunk * 4 + tm * min(tm, n) * 4  # f32 exp chunk + diag
    out = 2 * n_mats * tm * 4
    return inputs + temps + out + (2 << 20)


def _plan(n, itemsize, budget):
    """Pick (group_size, row_tile, col_chunk) for n a multiple of 128."""
    col_chunk = _col_chunk_for(n)
    for group in (6, 3, 1):
        if _vmem_need(128, n, group, itemsize, col_chunk) > budget:
            continue
        # Largest row tile that divides n, fits the budget, and leaves at
        # least 2 grid steps (so both v7x TensorCores get work).
        cap_tm = max(128, ((n // 2) // 128) * 128) if n >= 256 else 128
        tm = 128
        t = cap_tm
        while t >= 128:
            if n % t == 0 and _vmem_need(t, n, group, itemsize, col_chunk) <= budget:
                tm = t
                break
            t -= 128
        return group, tm, col_chunk
    # TODO(synk): N so large that even one double-buffered (128, N) block per
    # call exceeds VMEM would need a column-tiled online-logsumexp variant.
    return 1, 128, col_chunk


def _ce_rows(mats, tm, col_chunk, vmem_limit):
    """One pallas_call over len(mats) matrices -> (len(mats), N) per-row CE."""
    n_mats = len(mats)
    n = mats[0].shape[0]
    itemsize = jnp.dtype(mats[0].dtype).itemsize
    num_tiles = n // tm
    kernel = functools.partial(_clipp_ce_kernel, col_chunk=col_chunk)
    cost = pl.CostEstimate(
        flops=4 * n_mats * n * n,
        transcendentals=n_mats * n * n + n_mats * n,
        bytes_accessed=n_mats * n * n * itemsize + n_mats * n * 4,
    )
    return pl.pallas_call(
        kernel,
        out_shape=jax.ShapeDtypeStruct((n_mats, n), jnp.float32),
        grid=(num_tiles,),
        in_specs=[pl.BlockSpec((tm, n), lambda i: (i, 0))] * n_mats,
        out_specs=pl.BlockSpec((n_mats, tm), lambda i: (0, i)),
        compiler_params=pltpu.CompilerParams(
            dimension_semantics=("parallel",),
            vmem_limit_bytes=vmem_limit,
        ),
        cost_estimate=cost,
    )(*mats)


def clipp_loss(logits_per_text_path,
               logits_per_path_text,
               logits_per_images_path,
               logits_per_path_images,
               logits_per_image_text,
               logits_per_text_image,
               *,
               row_tile=None,
               col_chunk=None):
    """Pallas implementation of CLIPPLoss.forward -> scalar float32."""
    mats = (logits_per_text_path, logits_per_path_text,
            logits_per_images_path, logits_per_path_images,
            logits_per_image_text, logits_per_text_image)
    n = mats[0].shape[0]
    for m in mats:
        assert m.shape == (n, n), "all six logits matrices must be (N, N)"
    dtype = mats[0].dtype
    itemsize = jnp.dtype(dtype).itemsize

    cap = _vmem_capacity_bytes()
    budget = max(cap - _HEADROOM, 16 << 20)

    n_work = n
    if n % 128 != 0:
        # Irregular N: one full tile if it fits VMEM, otherwise pad batch and
        # class axes to a multiple of 128 (pad value underflows exp to zero;
        # padded rows are dropped below).
        if _vmem_need(n, n, 6, itemsize, n) <= budget:
            group, tm, cc = 6, n, n
        else:
            n_work = 128 * pl.cdiv(n, 128)
            fill = float(jnp.finfo(dtype).min)
            pad = n_work - n
            mats = tuple(jnp.pad(m, ((0, pad), (0, pad)), constant_values=fill)
                         for m in mats)
            group, tm, cc = _plan(n_work, itemsize, budget)
    else:
        group, tm, cc = _plan(n_work, itemsize, budget)

    if row_tile is not None:
        assert n_work % row_tile == 0, (n_work, row_tile)
        tm = row_tile
    if col_chunk is not None:
        assert n_work % col_chunk == 0, (n_work, col_chunk)
        cc = col_chunk

    need = _vmem_need(tm, n_work, group, itemsize, cc)
    vmem_limit = int(min(max(need + (4 << 20), 32 << 20), cap - (4 << 20)))

    ce_parts = []
    for g0 in range(0, 6, group):
        ce = _ce_rows(mats[g0:g0 + group], tm, cc, vmem_limit)
        ce_parts.append(ce[:, :n])  # drop padded rows, if any
    # mean over all 6*N per-row cross-entropies == mean of the six CE means.
    return jnp.mean(jnp.concatenate(ce_parts, axis=0))


def _reference(mats):
    x = jnp.stack([m.astype(jnp.float32) for m in mats], axis=0)
    lse = jax.nn.logsumexp(x, axis=-1)
    diag = jnp.diagonal(x, axis1=-2, axis2=-1)
    return jnp.mean(lse - diag)


if __name__ == "__main__":
    key = jax.random.PRNGKey(0)

    def make_logits(n, k, dtype=jnp.float32):
        ks = jax.random.split(k, 6)
        return [(jax.random.normal(kk, (n, n), dtype=jnp.float32) * 3.0).astype(dtype)
                for kk in ks]

    # 1) Tiny batch: single-tile path (block == full array dims).
    logits_small = make_logits(8, jax.random.fold_in(key, 0))
    loss_small = jax.block_until_ready(clipp_loss(*logits_small))
    ref_small = _reference(logits_small)
    assert jnp.allclose(loss_small, ref_small, atol=1e-4, rtol=1e-5), (
        loss_small, ref_small)

    # 2) N=256 f32 with forced row tiling + column chunking: grid=(2,), two
    #    column chunks (exercises the fori_loop logsumexp path and the
    #    per-tile dynamic diagonal slice).
    logits_big = make_logits(256, jax.random.fold_in(key, 1))
    loss_big = jax.block_until_ready(
        clipp_loss(*logits_big, row_tile=128, col_chunk=128))
    ref_big = _reference(logits_big)
    assert jnp.allclose(loss_big, ref_big, atol=1e-4, rtol=1e-5), (
        loss_big, ref_big)

    # 3) N=256 bf16 inputs (the HBM-bandwidth lever), automatic planning:
    #    tm=128 -> 2 grid steps so both v7x TensorCores get work.
    logits_bf16 = make_logits(256, jax.random.fold_in(key, 2), dtype=jnp.bfloat16)
    loss_bf16 = jax.block_until_ready(clipp_loss(*logits_bf16))
    ref_bf16 = _reference(logits_bf16)
    assert jnp.allclose(loss_bf16, ref_bf16, atol=2e-3, rtol=1e-4), (
        loss_bf16, ref_bf16)

    print("KERNEL_OK")
</pallas_src>

<mosaic_0001>
module attributes {stable_mosaic.version = 11 : i64} {
  func.func @_clipp_ce_kernel(%arg0: i32, %arg1: memref<8x8xf32, #tpu.memory_space<vmem>>, %arg2: memref<8x8xf32, #tpu.memory_space<vmem>>, %arg3: memref<8x8xf32, #tpu.memory_space<vmem>>, %arg4: memref<8x8xf32, #tpu.memory_space<vmem>>, %arg5: memref<8x8xf32, #tpu.memory_space<vmem>>, %arg6: memref<8x8xf32, #tpu.memory_space<vmem>>, %arg7: memref<6x8xf32, #tpu.memory_space<vmem>>) attributes {dimension_semantics = [#tpu.dimension_semantics<parallel>], iteration_bounds = array<i64: 1>, scalar_prefetch = 0 : i64, scratch_operands = 0 : i64, tpu.core_type = #tpu.core_type<tc>, window_params = [{transform_indices = @transform_0, window_bounds = array<i64: 8, 8>}, {transform_indices = @transform_1, window_bounds = array<i64: 8, 8>}, {transform_indices = @transform_2, window_bounds = array<i64: 8, 8>}, {transform_indices = @transform_3, window_bounds = array<i64: 8, 8>}, {transform_indices = @transform_4, window_bounds = array<i64: 8, 8>}, {transform_indices = @transform_5, window_bounds = array<i64: 8, 8>}, {transform_indices = @transform_6, window_bounds = array<i64: 6, 8>}]} {
    %0 = tpu.iota {dimensions = array<i32: 0>} : vector<8x8xi32>
    %1 = tpu.iota {dimensions = array<i32: 1>} : vector<8x8xi32>
    %2 = arith.cmpi eq, %0, %1 : vector<8x8xi32>
    %c0 = arith.constant 0 : index
    %c0_0 = arith.constant 0 : index
    %3 = vector.load %arg1[%c0, %c0_0] : memref<8x8xf32, #tpu.memory_space<vmem>>, vector<8x8xf32>
    %cst = arith.constant dense<0xFF800000> : vector<8xf32>
    %4 = vector.multi_reduction <maximumf>, %3, %cst [1] : vector<8x8xf32> to vector<8xf32>
    %5 = vector.shape_cast %4 : vector<8xf32> to vector<8x1xf32>
    %c0_1 = arith.constant 0 : index
    %c0_2 = arith.constant 0 : index
    %6 = vector.load %arg1[%c0_1, %c0_2] : memref<8x8xf32, #tpu.memory_space<vmem>>, vector<8x8xf32>
    %7 = vector.broadcast %5 : vector<8x1xf32> to vector<8x8xf32>
    %8 = arith.subf %6, %7 : vector<8x8xf32>
    %9 = math.exp %8 : vector<8x8xf32>
    %cst_3 = arith.constant dense<0.000000e+00> : vector<8xf32>
    %10 = vector.multi_reduction <add>, %9, %cst_3 [1] : vector<8x8xf32> to vector<8xf32>
    %11 = math.log %10 : vector<8xf32>
    %12 = arith.addf %4, %11 : vector<8xf32>
    %c0_4 = arith.constant 0 : index
    %c0_5 = arith.constant 0 : index
    %13 = vector.load %arg1[%c0_4, %c0_5] : memref<8x8xf32, #tpu.memory_space<vmem>>, vector<8x8xf32>
    %cst_6 = arith.constant 0.000000e+00 : f32
    %14 = vector.broadcast %cst_6 : f32 to vector<8x8xf32>
    %15 = arith.select %2, %13, %14 : vector<8x8xi1>, vector<8x8xf32>
    %cst_7 = arith.constant dense<0.000000e+00> : vector<8xf32>
    %16 = vector.multi_reduction <add>, %15, %cst_7 [1] : vector<8x8xf32> to vector<8xf32>
    %17 = arith.subf %12, %16 : vector<8xf32>
    %c0_8 = arith.constant 0 : index
    %c0_9 = arith.constant 0 : index
    %18 = vector.load %arg7[%c0_8, %c0_9] : memref<6x8xf32, #tpu.memory_space<vmem>>, vector<1x8xf32>
    %19 = vector.shape_cast %18 : vector<1x8xf32> to vector<8xf32>
    %20 = vector.shape_cast %17 : vector<8xf32> to vector<1x8xf32>
    tpu.vector_store %arg7[%c0_8, %c0_9], %20 {strides = array<i32>} : memref<6x8xf32, #tpu.memory_space<vmem>>, vector<1x8xf32>,
    %c0_10 = arith.constant 0 : index
    %c0_11 = arith.constant 0 : index
    %21 = vector.load %arg2[%c0_10, %c0_11] : memref<8x8xf32, #tpu.memory_space<vmem>>, vector<8x8xf32>
    %cst_12 = arith.constant dense<0xFF800000> : vector<8xf32>
    %22 = vector.multi_reduction <maximumf>, %21, %cst_12 [1] : vector<8x8xf32> to vector<8xf32>
    %23 = vector.shape_cast %22 : vector<8xf32> to vector<8x1xf32>
    %c0_13 = arith.constant 0 : index
    %c0_14 = arith.constant 0 : index
    %24 = vector.load %arg2[%c0_13, %c0_14] : memref<8x8xf32, #tpu.memory_space<vmem>>, vector<8x8xf32>
    %25 = vector.broadcast %23 : vector<8x1xf32> to vector<8x8xf32>
    %26 = arith.subf %24, %25 : vector<8x8xf32>
    %27 = math.exp %26 : vector<8x8xf32>
    %cst_15 = arith.constant dense<0.000000e+00> : vector<8xf32>
    %28 = vector.multi_reduction <add>, %27, %cst_15 [1] : vector<8x8xf32> to vector<8xf32>
    %29 = math.log %28 : vector<8xf32>
    %30 = arith.addf %22, %29 : vector<8xf32>
    %c0_16 = arith.constant 0 : index
    %c0_17 = arith.constant 0 : index
    %31 = vector.load %arg2[%c0_16, %c0_17] : memref<8x8xf32, #tpu.memory_space<vmem>>, vector<8x8xf32>
    %cst_18 = arith.constant 0.000000e+00 : f32
    %32 = vector.broadcast %cst_18 : f32 to vector<8x8xf32>
    %33 = arith.select %2, %31, %32 : vector<8x8xi1>, vector<8x8xf32>
    %cst_19 = arith.constant dense<0.000000e+00> : vector<8xf32>
    %34 = vector.multi_reduction <add>, %33, %cst_19 [1] : vector<8x8xf32> to vector<8xf32>
    %35 = arith.subf %30, %34 : vector<8xf32>
    %c1 = arith.constant 1 : index
    %c0_20 = arith.constant 0 : index
    %36 = vector.load %arg7[%c1, %c0_20] : memref<6x8xf32, #tpu.memory_space<vmem>>, vector<1x8xf32>
    %37 = vector.shape_cast %36 : vector<1x8xf32> to vector<8xf32>
    %38 = vector.shape_cast %35 : vector<8xf32> to vector<1x8xf32>
    tpu.vector_store %arg7[%c1, %c0_20], %38 {strides = array<i32>} : memref<6x8xf32, #tpu.memory_space<vmem>>, vector<1x8xf32>,
    %c0_21 = arith.constant 0 : index
    %c0_22 = arith.constant 0 : index
    %39 = vector.load %arg3[%c0_21, %c0_22] : memref<8x8xf32, #tpu.memory_space<vmem>>, vector<8x8xf32>
    %cst_23 = arith.constant dense<0xFF800000> : vector<8xf32>
    %40 = vector.multi_reduction <maximumf>, %39, %cst_23 [1] : vector<8x8xf32> to vector<8xf32>
    %41 = vector.shape_cast %40 : vector<8xf32> to vector<8x1xf32>
    %c0_24 = arith.constant 0 : index
    %c0_25 = arith.constant 0 : index
    %42 = vector.load %arg3[%c0_24, %c0_25] : memref<8x8xf32, #tpu.memory_space<vmem>>, vector<8x8xf32>
    %43 = vector.broadcast %41 : vector<8x1xf32> to vector<8x8xf32>
    %44 = arith.subf %42, %43 : vector<8x8xf32>
    %45 = math.exp %44 : vector<8x8xf32>
    %cst_26 = arith.constant dense<0.000000e+00> : vector<8xf32>
    %46 = vector.multi_reduction <add>, %45, %cst_26 [1] : vector<8x8xf32> to vector<8xf32>
    %47 = math.log %46 : vector<8xf32>
    %48 = arith.addf %40, %47 : vector<8xf32>
    %c0_27 = arith.constant 0 : index
    %c0_28 = arith.constant 0 : index
    %49 = vector.load %arg3[%c0_27, %c0_28] : memref<8x8xf32, #tpu.memory_space<vmem>>, vector<8x8xf32>
    %cst_29 = arith.constant 0.000000e+00 : f32
    %50 = vector.broadcast %cst_29 : f32 to vector<8x8xf32>
    %51 = arith.select %2, %49, %50 : vector<8x8xi1>, vector<8x8xf32>
    %cst_30 = arith.constant dense<0.000000e+00> : vector<8xf32>
    %52 = vector.multi_reduction <add>, %51, %cst_30 [1] : vector<8x8xf32> to vector<8xf32>
    %53 = arith.subf %48, %52 : vector<8xf32>
    %c2 = arith.constant 2 : index
    %c0_31 = arith.constant 0 : index
    %54 = vector.load %arg7[%c2, %c0_31] : memref<6x8xf32, #tpu.memory_space<vmem>>, vector<1x8xf32>
    %55 = vector.shape_cast %54 : vector<1x8xf32> to vector<8xf32>
    %56 = vector.shape_cast %53 : vector<8xf32> to vector<1x8xf32>
    tpu.vector_store %arg7[%c2, %c0_31], %56 {strides = array<i32>} : memref<6x8xf32, #tpu.memory_space<vmem>>, vector<1x8xf32>,
    %c0_32 = arith.constant 0 : index
    %c0_33 = arith.constant 0 : index
    %57 = vector.load %arg4[%c0_32, %c0_33] : memref<8x8xf32, #tpu.memory_space<vmem>>, vector<8x8xf32>
    %cst_34 = arith.constant dense<0xFF800000> : vector<8xf32>
    %58 = vector.multi_reduction <maximumf>, %57, %cst_34 [1] : vector<8x8xf32> to vector<8xf32>
    %59 = vector.shape_cast %58 : vector<8xf32> to vector<8x1xf32>
    %c0_35 = arith.constant 0 : index
    %c0_36 = arith.constant 0 : index
    %60 = vector.load %arg4[%c0_35, %c0_36] : memref<8x8xf32, #tpu.memory_space<vmem>>, vector<8x8xf32>
    %61 = vector.broadcast %59 : vector<8x1xf32> to vector<8x8xf32>
    %62 = arith.subf %60, %61 : vector<8x8xf32>
    %63 = math.exp %62 : vector<8x8xf32>
    %cst_37 = arith.constant dense<0.000000e+00> : vector<8xf32>
    %64 = vector.multi_reduction <add>, %63, %cst_37 [1] : vector<8x8xf32> to vector<8xf32>
    %65 = math.log %64 : vector<8xf32>
    %66 = arith.addf %58, %65 : vector<8xf32>
    %c0_38 = arith.constant 0 : index
    %c0_39 = arith.constant 0 : index
    %67 = vector.load %arg4[%c0_38, %c0_39] : memref<8x8xf32, #tpu.memory_space<vmem>>, vector<8x8xf32>
    %cst_40 = arith.constant 0.000000e+00 : f32
    %68 = vector.broadcast %cst_40 : f32 to vector<8x8xf32>
    %69 = arith.select %2, %67, %68 : vector<8x8xi1>, vector<8x8xf32>
    %cst_41 = arith.constant dense<0.000000e+00> : vector<8xf32>
    %70 = vector.multi_reduction <add>, %69, %cst_41 [1] : vector<8x8xf32> to vector<8xf32>
    %71 = arith.subf %66, %70 : vector<8xf32>
    %c3 = arith.constant 3 : index
    %c0_42 = arith.constant 0 : index
    %72 = vector.load %arg7[%c3, %c0_42] : memref<6x8xf32, #tpu.memory_space<vmem>>, vector<1x8xf32>
    %73 = vector.shape_cast %72 : vector<1x8xf32> to vector<8xf32>
    %74 = vector.shape_cast %71 : vector<8xf32> to vector<1x8xf32>
    tpu.vector_store %arg7[%c3, %c0_42], %74 {strides = array<i32>} : memref<6x8xf32, #tpu.memory_space<vmem>>, vector<1x8xf32>,
    %c0_43 = arith.constant 0 : index
    %c0_44 = arith.constant 0 : index
    %75 = vector.load %arg5[%c0_43, %c0_44] : memref<8x8xf32, #tpu.memory_space<vmem>>, vector<8x8xf32>
    %cst_45 = arith.constant dense<0xFF800000> : vector<8xf32>
    %76 = vector.multi_reduction <maximumf>, %75, %cst_45 [1] : vector<8x8xf32> to vector<8xf32>
    %77 = vector.shape_cast %76 : vector<8xf32> to vector<8x1xf32>
    %c0_46 = arith.constant 0 : index
    %c0_47 = arith.constant 0 : index
    %78 = vector.load %arg5[%c0_46, %c0_47] : memref<8x8xf32, #tpu.memory_space<vmem>>, vector<8x8xf32>
    %79 = vector.broadcast %77 : vector<8x1xf32> to vector<8x8xf32>
    %80 = arith.subf %78, %79 : vector<8x8xf32>
    %81 = math.exp %80 : vector<8x8xf32>
    %cst_48 = arith.constant dense<0.000000e+00> : vector<8xf32>
    %82 = vector.multi_reduction <add>, %81, %cst_48 [1] : vector<8x8xf32> to vector<8xf32>
    %83 = math.log %82 : vector<8xf32>
    %84 = arith.addf %76, %83 : vector<8xf32>
    %c0_49 = arith.constant 0 : index
    %c0_50 = arith.constant 0 : index
    %85 = vector.load %arg5[%c0_49, %c0_50] : memref<8x8xf32, #tpu.memory_space<vmem>>, vector<8x8xf32>
    %cst_51 = arith.constant 0.000000e+00 : f32
    %86 = vector.broadcast %cst_51 : f32 to vector<8x8xf32>
    %87 = arith.select %2, %85, %86 : vector<8x8xi1>, vector<8x8xf32>
    %cst_52 = arith.constant dense<0.000000e+00> : vector<8xf32>
    %88 = vector.multi_reduction <add>, %87, %cst_52 [1] : vector<8x8xf32> to vector<8xf32>
    %89 = arith.subf %84, %88 : vector<8xf32>
    %c4 = arith.constant 4 : index
    %c0_53 = arith.constant 0 : index
    %90 = vector.load %arg7[%c4, %c0_53] : memref<6x8xf32, #tpu.memory_space<vmem>>, vector<1x8xf32>
    %91 = vector.shape_cast %90 : vector<1x8xf32> to vector<8xf32>
    %92 = vector.shape_cast %89 : vector<8xf32> to vector<1x8xf32>
    tpu.vector_store %arg7[%c4, %c0_53], %92 {strides = array<i32>} : memref<6x8xf32, #tpu.memory_space<vmem>>, vector<1x8xf32>,
    %c0_54 = arith.constant 0 : index
    %c0_55 = arith.constant 0 : index
    %93 = vector.load %arg6[%c0_54, %c0_55] : memref<8x8xf32, #tpu.memory_space<vmem>>, vector<8x8xf32>
    %cst_56 = arith.constant dense<0xFF800000> : vector<8xf32>
    %94 = vector.multi_reduction <maximumf>, %93, %cst_56 [1] : vector<8x8xf32> to vector<8xf32>
    %95 = vector.shape_cast %94 : vector<8xf32> to vector<8x1xf32>
    %c0_57 = arith.constant 0 : index
    %c0_58 = arith.constant 0 : index
    %96 = vector.load %arg6[%c0_57, %c0_58] : memref<8x8xf32, #tpu.memory_space<vmem>>, vector<8x8xf32>
    %97 = vector.broadcast %95 : vector<8x1xf32> to vector<8x8xf32>
    %98 = arith.subf %96, %97 : vector<8x8xf32>
    %99 = math.exp %98 : vector<8x8xf32>
    %cst_59 = arith.constant dense<0.000000e+00> : vector<8xf32>
    %100 = vector.multi_reduction <add>, %99, %cst_59 [1] : vector<8x8xf32> to vector<8xf32>
    %101 = math.log %100 : vector<8xf32>
    %102 = arith.addf %94, %101 : vector<8xf32>
    %c0_60 = arith.constant 0 : index
    %c0_61 = arith.constant 0 : index
    %103 = vector.load %arg6[%c0_60, %c0_61] : memref<8x8xf32, #tpu.memory_space<vmem>>, vector<8x8xf32>
    %cst_62 = arith.constant 0.000000e+00 : f32
    %104 = vector.broadcast %cst_62 : f32 to vector<8x8xf32>
    %105 = arith.select %2, %103, %104 : vector<8x8xi1>, vector<8x8xf32>
    %cst_63 = arith.constant dense<0.000000e+00> : vector<8xf32>
    %106 = vector.multi_reduction <add>, %105, %cst_63 [1] : vector<8x8xf32> to vector<8xf32>
    %107 = arith.subf %102, %106 : vector<8xf32>
    %c5 = arith.constant 5 : index
    %c0_64 = arith.constant 0 : index
    %108 = vector.load %arg7[%c5, %c0_64] : memref<6x8xf32, #tpu.memory_space<vmem>>, vector<1x8xf32>
    %109 = vector.shape_cast %108 : vector<1x8xf32> to vector<8xf32>
    %110 = vector.shape_cast %107 : vector<8xf32> to vector<1x8xf32>
    tpu.vector_store %arg7[%c5, %c0_64], %110 {strides = array<i32>} : memref<6x8xf32, #tpu.memory_space<vmem>>, vector<1x8xf32>,
    return
  }
  func.func @transform_0(%arg0: i32) -> (i32, i32) {
    %c0_i32 = arith.constant 0 : i32
    %c0_i32_0 = arith.constant 0 : i32
    return %arg0, %c0_i32 : i32, i32
  }
  func.func @transform_1(%arg0: i32) -> (i32, i32) {
    %c0_i32 = arith.constant 0 : i32
    %c0_i32_0 = arith.constant 0 : i32
    return %arg0, %c0_i32 : i32, i32
  }
  func.func @transform_2(%arg0: i32) -> (i32, i32) {
    %c0_i32 = arith.constant 0 : i32
    %c0_i32_0 = arith.constant 0 : i32
    return %arg0, %c0_i32 : i32, i32
  }
  func.func @transform_3(%arg0: i32) -> (i32, i32) {
    %c0_i32 = arith.constant 0 : i32
    %c0_i32_0 = arith.constant 0 : i32
    return %arg0, %c0_i32 : i32, i32
  }
  func.func @transform_4(%arg0: i32) -> (i32, i32) {
    %c0_i32 = arith.constant 0 : i32
    %c0_i32_0 = arith.constant 0 : i32
    return %arg0, %c0_i32 : i32, i32
  }
  func.func @transform_5(%arg0: i32) -> (i32, i32) {
    %c0_i32 = arith.constant 0 : i32
    %c0_i32_0 = arith.constant 0 : i32
    return %arg0, %c0_i32 : i32, i32
  }
  func.func @transform_6(%arg0: i32) -> (i32, i32) {
    %c0_i32 = arith.constant 0 : i32
    %c0_i32_0 = arith.constant 0 : i32
    return %c0_i32, %arg0 : i32, i32
  }
}

</mosaic_0001>

<bundles_post_ra>
// kernel: tpu_custom_call.1
= control target key start
LH: loop header
LB: loop body
LE: loop exit
PB: predicated region body
PF: predicated region fallthrough
CT: control target
= control target key end

     0   :  { %11 = vsyncpa [#allocation3], 0  ;;  %s578_s0 = inlined_call_operand.hbm [shape: f32[8,8], index: 0, kind: input, shape index: {}]   ;;  %s579_s1 = inlined_call_operand.hbm [shape: f32[8,8], index: 1, kind: input, shape index: {}]   ;;  %s580_s2 = inlined_call_operand.hbm [shape: f32[8,8], index: 2, kind: input, shape index: {}]   ;;  %s581_s3 = inlined_call_operand.hbm [shape: f32[8,8], index: 3, kind: input, shape index: {}]   ;;  %s582_s4 = inlined_call_operand.hbm [shape: f32[8,8], index: 4, kind: input, shape index: {}]   ;;  %s583_s5 = inlined_call_operand.vmem [shape: f32[8,8], index: 5, kind: input, shape index: {}]   ;;  %s584_s6 = inlined_call_operand.hbm [shape: f32[6,8], index: 6, kind: output, shape index: {}]  }
   0x1   :  { %12 = vsyncpa [#allocation6], 0 }
   0x2   :  { %13 = vsyncpa [#allocation9], 0 }
   0x3   :  { %14 = vsyncpa [#allocation4], 0  ;;  %s414_s21 = smov [#allocation5]   ;;  %s415_s23 = smov [#allocation8]  }
   0x4   :  { %s31_s22 = sshll.u32 %s414_s21, 4  ;;  %s51_s24 = sshll.u32 %s415_s23, 4  ;;  %s32_s22 = int_to_ptr.vmem [resolvable:$true] %s31_s22  ;;  %s52_s24 = int_to_ptr.vmem [resolvable:$true] %s51_s24 }
   0x5   :  { %s294_s25 = scalar_lea.vmem %s32_s22, 128  ;;  %p299_p1 = scmp.lt.s32.totalorder %s32_s22, %s32_s22 }
   0x6   :  { %p295_p0 = scmp.ne.s32.totalorder %s32_s22, %s294_s25  ;;  %p300_p2 = scmp.lt.s32.totalorder %s294_s25, %s294_s25 }
   0x8   :  { %p301_p3 = por %p300_p2, %p299_p1 }
   0xa   :  { %p302_p4 = pnand %p301_p3, %p295_p0 }
   0xc   :  { %305 = shalt.err (!%p302_p4)
}
   0xd   :  { %34 = dma.hbm_to_vmem [thread:$0]  %s579_s1, 128, %s32_s22, [#allocation6]  }
   0xe   :  { %s314_s28 = scalar_lea.vmem %s52_s24, 128  ;;  %p319_p6 = scmp.lt.s32.totalorder %s52_s24, %s52_s24 }
   0xf   :  { %p315_p5 = scmp.ne.s32.totalorder %s52_s24, %s314_s28  ;;  %p320_p7 = scmp.lt.s32.totalorder %s314_s28, %s314_s28 }
  0x11   :  { %p321_p8 = por %p320_p7, %p319_p6 }
  0x13   :  { %p322_p9 = pnand %p321_p8, %p315_p5 }
  0x15   :  { %325 = shalt.err (!%p322_p9)
}
  0x16   :  { %54 = dma.hbm_to_vmem [thread:$0]  %s581_s3, 128, %s52_s24, [#allocation9]  }
  0x17   :  { %s416_s7 = smov [#allocation2]   ;;  %s417_s9 = smov [#allocation7]  }
  0x18   :  { %s21_s8 = sshll.u32 %s416_s7, 4  ;;  %s41_s10 = sshll.u32 %s417_s9, 4  ;;  %s22_s8 = int_to_ptr.vmem [resolvable:$true] %s21_s8  ;;  %s42_s10 = int_to_ptr.vmem [resolvable:$true] %s41_s10 }
  0x19   :  { %s334_s11 = scalar_lea.vmem %s22_s8, 128  ;;  %p339_p11 = scmp.lt.s32.totalorder %s22_s8, %s22_s8 }
  0x1a   :  { %p335_p10 = scmp.ne.s32.totalorder %s22_s8, %s334_s11  ;;  %p340_p12 = scmp.lt.s32.totalorder %s334_s11, %s334_s11 }
  0x1c   :  { %p341_p13 = por %p340_p12, %p339_p11 }
  0x1e   :  { %p342_p0 = pnand %p341_p13, %p335_p10 }
  0x20   :  { %345 = shalt.err (!%p342_p0)
}
  0x21   :  { %24 = dma.hbm_to_vmem [thread:$0]  %s578_s0, 128, %s22_s8, [#allocation3]  }
  0x22   :  { %s354_s13 = scalar_lea.vmem %s42_s10, 128  ;;  %p359_p2 = scmp.lt.s32.totalorder %s42_s10, %s42_s10 }
  0x23   :  { %p355_p1 = scmp.ne.s32.totalorder %s42_s10, %s354_s13  ;;  %p360_p3 = scmp.lt.s32.totalorder %s354_s13, %s354_s13 }
  0x25   :  { %p361_p4 = por %p360_p3, %p359_p2 }
  0x27   :  { %p362_p5 = pnand %p361_p4, %p355_p1 }
  0x29   :  { %365 = shalt.err (!%p362_p5)
}
  0x2a   :  { %44 = dma.hbm_to_vmem [thread:$0]  %s580_s2, 128, %s42_s10, [#allocation6]  }
  0x2b   :  { %s418_s15 = smov [#allocation10]  }
  0x2c   :  { %s61_s16 = sshll.u32 %s418_s15, 4  ;;  %s62_s16 = int_to_ptr.vmem [resolvable:$true] %s61_s16 }
  0x2d   :  { %s374_s17 = scalar_lea.vmem %s62_s16, 128  ;;  %p379_p7 = scmp.lt.s32.totalorder %s62_s16, %s62_s16 }
  0x2e   :  { %p375_p6 = scmp.ne.s32.totalorder %s62_s16, %s374_s17  ;;  %p380_p8 = scmp.lt.s32.totalorder %s374_s17, %s374_s17 }
  0x30   :  { %p381_p9 = por %p380_p8, %p379_p7 }
  0x32   :  { %p382_p10 = pnand %p381_p9, %p375_p6 }
  0x34   :  { %385 = shalt.err (!%p382_p10)
}
  0x35   :  { %64 = dma.hbm_to_vmem [thread:$0]  %s582_s4, 128, %s62_s16, [#allocation9]  }
  0x36   :  { %406 = dma.done.wait [#allocation3], 128  }
  0x37   :  { %407 = vsyncadd [#allocation3], 4294967168 }
  0x38   :  { %408 = dma.done.wait [#allocation6], 256  }
  0x39   :  { %409 = vsyncadd [#allocation6], 4294967040 }
  0x3a   :  { %410 = dma.done.wait [#allocation9], 256  }
  0x3b   :  { %411 = vsyncadd [#allocation9], 4294967040  ;;  %vm88_vm0 = vcmask 64512   ;;  %v470_v0 = vld [vmem:[#allocation2] sm:$0xff]  ;;  %v472_v1 = vld [vmem:[#allocation7] sm:$0xff]  ;;  %v82_v12 = vlaneseq  ;;  %vm112_vm2 = vcmask 57344  }
  0x3c   :  { %v474_v2 = vld [vmem:[#allocation5] sm:$0xff]  ;;  %v89_v3 = vsel %vm88_vm0, %v470_v0, -inf  ;;  %v140_v4 = vsel %vm88_vm0, %v472_v1, -inf  ;;  %v480_v5 = vld [vmem:[#allocation8] sm:$0xff]  ;;  %v486_v8 = vld [vmem:[#allocation10] sm:$0xff] }
  0x3d   :  { %90 = vmax.xlane.f32.xlu0 %v89_v3  ;;  %141 = vmax.xlane.f32.xlu1 %v140_v4  ;;  %v115_v6 = vsel %vm88_vm0, %v474_v2, -inf  ;;  %v165_v7 = vsel %vm88_vm0, %v480_v5, -inf  ;;  %v491_v9 = vld [vmem:[%s583_s5] sm:$0xff]  ;;  %v190_v10 = vsel %vm88_vm0, %v486_v8, -inf  ;;  %v83_v13 = vshrl.u32 %v82_v12, 7  ;;  %s419_s5 = smov [#allocation11]  }
  0x3e   :  { %v215_v11 = vsel %vm88_vm0, %v491_v9, -inf  ;;  %v85_v14 = vand.u32 127, %v82_v12  ;;  %s245_s19 = sshll.u32 %s419_s5, 4  ;;  %s246_s19 = int_to_ptr.vmem [resolvable:$true] %s245_s19 }
  0x3f   :  { %s386_s20 = scalar_lea.vmem %s246_s19, 128  ;;  %p391_p12 = scmp.lt.s32.totalorder %s246_s19, %s246_s19 }
  0x40   :  { %v497_v15 = vsub.s32 %v85_v14, %v83_v13  ;;  %vm526_vm1 = vcmp.eq.s32.totalorder %v83_v13, %v85_v14  ;;  %p387_p11 = scmp.ne.s32.totalorder %s246_s19, %s386_s20  ;;  %p392_p13 = scmp.lt.s32.totalorder %s386_s20, %s386_s20 }
  0x41   :  { %116 = vmax.xlane.f32.xlu0 %v115_v6  ;;  %166 = vmax.xlane.f32.xlu1 %v165_v7  ;;  %v101_v44 = vsel %vm526_vm1, %v470_v0, 0.0  ;;  %v127_v49 = vsel %vm526_vm1, %v474_v2, 0.0  ;;  %v152_v50 = vsel %vm526_vm1, %v472_v1, 0.0  ;;  %v177_v53 = vsel %vm526_vm1, %v480_v5, 0.0 }
  0x42   :  { %v102_v48 = vsel %vm88_vm0, %v101_v44, 0.0  ;;  %v128_v51 = vsel %vm88_vm0, %v127_v49, 0.0  ;;  %v153_v52 = vsel %vm88_vm0, %v152_v50, 0.0  ;;  %v202_v54 = vsel %vm526_vm1, %v486_v8, 0.0  ;;  %p393_p0 = por %p392_p13, %p391_p12 }
  0x43   :  { %v178_v55 = vsel %vm88_vm0, %v177_v53, 0.0  ;;  %v203_v56 = vsel %vm88_vm0, %v202_v54, 0.0  ;;  %v227_v57 = vsel %vm526_vm1, %v491_v9, 0.0 }
  0x44   :  { %v228_v58 = vsel %vm88_vm0, %v227_v57, 0.0  ;;  %p394_p1 = pnand %p393_p0, %p387_p11 }
  0x45   :  { %191 = vmax.xlane.f32.xlu0 %v190_v10  ;;  %216 = vmax.xlane.f32.xlu1 %v215_v11 }
  0xc6   :  { %v499_v16 = vpop.xlane.xlu0 %90  ;;  %v501_v17 = vpop.xlane.xlu1 %141 }
  0xc7   :  { %v92_v18 = vsub.f32 %v470_v0, %v499_v16  ;;  %v143_v19 = vsub.f32 %v472_v1, %v501_v17 }
  0xc9   :  { %v93_v20 = vmul.f32 1.442695, %v92_v18  ;;  %v144_v21 = vmul.f32 1.442695, %v143_v19 }
  0xca   :  { %v507_v22 = vpop.xlane.xlu0 %116  ;;  %v509_v23 = vpop.xlane.xlu1 %166 }
  0xcb   :  { %262 = vpow2.f32 %v93_v20  ;;  %v118_v24 = vsub.f32 %v474_v2, %v507_v22  ;;  %v168_v25 = vsub.f32 %v480_v5, %v509_v23 }
  0xcc   :  { %264 = vpow2.f32 %v144_v21 }
  0xcd   :  { %v119_v26 = vmul.f32 1.442695, %v118_v24  ;;  %v169_v27 = vmul.f32 1.442695, %v168_v25 }
  0xce   :  { %v515_v28 = vpop.xlane.xlu0 %191  ;;  %v517_v29 = vpop.xlane.xlu1 %216 }
  0xcf   :  { %266 = vpow2.f32 %v119_v26  ;;  %v193_v30 = vsub.f32 %v486_v8, %v515_v28  ;;  %v218_v31 = vsub.f32 %v491_v9, %v517_v29 }
  0xd0   :  { %268 = vpow2.f32 %v169_v27 }
  0xd1   :  { %v194_v32 = vmul.f32 1.442695, %v193_v30  ;;  %v219_v33 = vmul.f32 1.442695, %v218_v31 }
  0xd3   :  { %270 = vpow2.f32 %v194_v32 }
  0xd4   :  { %272 = vpow2.f32 %v219_v33 }
  0xd8   :  { %v263_v34 = vpop.eup %262 }
  0xd9   :  { %v265_v35 = vpop.eup %264  ;;  %v95_v36 = vsel %vm88_vm0, %v263_v34, 0.0 }
  0xda   :  { %96 = vadd.xlane.f32.xlu0 %v95_v36  ;;  %v146_v37 = vsel %vm88_vm0, %v265_v35, 0.0 }
  0xdc   :  { %v267_v38 = vpop.eup %266 }
  0xdd   :  { %v269_v39 = vpop.eup %268  ;;  %v121_v40 = vsel %vm88_vm0, %v267_v38, 0.0 }
  0xde   :  { %147 = vadd.xlane.f32.xlu0 %v146_v37  ;;  %122 = vadd.xlane.f32.xlu1 %v121_v40  ;;  %v171_v42 = vsel %vm88_vm0, %v269_v39, 0.0 }
  0xe0   :  { %v271_v43 = vpop.eup %270 }
  0xe1   :  { %v273_v45 = vpop.eup %272  ;;  %v196_v46 = vsel %vm88_vm0, %v271_v43, 0.0 }
  0xe2   :  { %172 = vadd.xlane.f32.xlu1 %v171_v42  ;;  %197 = vadd.xlane.f32.xlu0 %v196_v46  ;;  %v221_v47 = vsel %vm88_vm0, %v273_v45, 0.0 }
  0xe6   :  { %222 = vadd.xlane.f32.xlu1 %v221_v47  ;;  %103 = vadd.xlane.f32.xlu0 %v102_v48 }
  0xea   :  { %129 = vadd.xlane.f32.xlu1 %v128_v51  ;;  %154 = vadd.xlane.f32.xlu0 %v153_v52 }
  0xee   :  { %179 = vadd.xlane.f32.xlu1 %v178_v55  ;;  %204 = vadd.xlane.f32.xlu0 %v203_v56 }
  0xf2   :  { %229 = vadd.xlane.f32.xlu1 %v228_v58 }
 0x163   :  { %v97_v59 = vpop.xlane.xlu0 %96 }
 0x164   :  { %274 = vlog2.f32 %v97_v59 }
 0x167   :  { %v123_v60 = vpop.xlane.xlu1 %122  ;;  %v148_v61 = vpop.xlane.xlu0 %147 }
 0x168   :  { %276 = vlog2.f32 %v123_v60 }
 0x169   :  { %278 = vlog2.f32 %v148_v61 }
 0x16b   :  { %v173_v62 = vpop.xlane.xlu1 %172  ;;  %v198_v63 = vpop.xlane.xlu0 %197 }
 0x16c   :  { %280 = vlog2.f32 %v173_v62 }
 0x16d   :  { %282 = vlog2.f32 %v198_v63 }
 0x16f   :  { %v223_v0 = vpop.xlane.xlu1 %222  ;;  %v104_v1 = vpop.xlane.xlu0 %103 }
 0x170   :  { %284 = vlog2.f32 %v223_v0 }
 0x171   :  { %v275_v2 = vpop.eup %274 }
 0x172   :  { %v99_v3 = vmul.f32 0.6931472, %v275_v2 }
 0x173   :  { %v130_v4 = vpop.xlane.xlu1 %129  ;;  %v155_v10 = vpop.xlane.xlu0 %154 }
 0x174   :  { %v100_v5 = vadd.f32 %v99_v3, %v499_v16 }
 0x175   :  { %v277_v6 = vpop.eup %276 }
 0x176   :  { %v279_v7 = vpop.eup %278  ;;  %v125_v8 = vmul.f32 0.6931472, %v277_v6  ;;  %v105_v9 = vsub.f32 %v100_v5, %v104_v1 }
 0x177   :  { %v150_v11 = vmul.f32 0.6931472, %v279_v7  ;;  %v180_v19 = vpop.xlane.xlu1 %179  ;;  %v205_v30 = vpop.xlane.xlu0 %204 }
 0x178   :  { %v110_v12 = vrot.slane %v105_v9, %v497_v15  ;;  %v126_v13 = vadd.f32 %v125_v8, %v507_v22 }
 0x179   :  { %v281_v14 = vpop.eup %280  ;;  %v151_v18 = vadd.f32 %v150_v11, %v501_v17 }
 0x17a   :  { %v283_v20 = vpop.eup %282  ;;  %v175_v21 = vmul.f32 0.6931472, %v281_v14  ;;  %113 = vst.msk [vmem:[#allocation11] sm:$0x1] %vm112_vm2, %v110_v12  ;;  %v131_v16 = vsub.f32 %v126_v13, %v130_v4 }
 0x17b   :  { %v200_v24 = vmul.f32 0.6931472, %v283_v20  ;;  %v156_v25 = vsub.f32 %v151_v18, %v155_v10  ;;  %v230_v35 = vpop.xlane.xlu1 %229 }
 0x17c   :  { %v136_v26 = vrot.slane %v131_v16, %v497_v15  ;;  %v176_v27 = vadd.f32 %v175_v21, %v509_v23 }
 0x17d   :  { %v285_v31 = vpop.eup %284  ;;  %v161_v32 = vrot.slane %v156_v25, %v497_v15  ;;  %v201_v22 = vadd.f32 %v200_v24, %v515_v28 }
 0x17e   :  { %v225_v33 = vmul.f32 0.6931472, %v285_v31  ;;  %138 = vst.msk [vmem:[#allocation11 + $0x1] sm:$0x1] %vm112_vm2, %v136_v26  ;;  %v181_v17 = vsub.f32 %v176_v27, %v180_v19 }
 0x17f   :  { %163 = vst.msk [vmem:[#allocation11 + $0x2] sm:$0x1] %vm112_vm2, %v161_v32  ;;  %v206_v34 = vsub.f32 %v201_v22, %v205_v30 }
 0x180   :  { %v186_v36 = vrot.slane %v181_v17, %v497_v15  ;;  %v226_v37 = vadd.f32 %v225_v33, %v517_v29 }
 0x181   :  { %v211_v23 = vrot.slane %v206_v34, %v497_v15 }
 0x182   :  { %188 = vst.msk [vmem:[#allocation11 + $0x3] sm:$0x1] %vm112_vm2, %v186_v36  ;;  %v231_v38 = vsub.f32 %v226_v37, %v230_v35 }
 0x183   :  { %213 = vst.msk [vmem:[#allocation11 + $0x4] sm:$0x1] %vm112_vm2, %v211_v23 }
 0x184   :  { %v236_v28 = vrot.slane %v231_v38, %v497_v15 }
 0x186   :  { %238 = vst.msk [vmem:[#allocation11 + $0x5] sm:$0x1] %vm112_vm2, %v236_v28 }
 0x187   :  { %397 = shalt.err (!%p394_p1)
}
 0x188   :  { %248 = dma.vmem_to_hbm [thread:$0]  %s246_s19, 128, %s584_s6, [#allocation4]  }
 0x189   :  { %412 = dma.done.wait [#allocation4], 128  }
 0x18a   :  { %413 = vsyncadd [#allocation4], 4294967168 }
 0x18b   :  { %252 = vsyncpa [#allocation3], 1 }
 0x18c   :  { %253 = vsyncpa [#allocation6], 1 }
 0x18d   :  { %254 = vsyncpa [#allocation9], 1 }
 0x18e   :  { %255 = vsyncpa [#allocation4], 1 }

</bundles_post_ra>
